<compile_context>
chip_gen: v7x
topology: tpu7x:2x2x1
jax: 0.10.0
libtpu: 0.0.40
codegen_flags: <defaults>
</compile_context>

<pallas_src>
import jax
import jax.numpy as jnp
from jax.experimental import pallas as pl
from jax.experimental.pallas import tpu as pltpu

N_ACTIONS = 3   # env.action_space.n for MountainCar-v0
IN_DIM = 2      # MountainCar observation: (position, velocity)
HIDDEN = 32


def _round_up(x, m):
    return ((x + m - 1) // m) * m


def _mlp_kernel(xT_ref, w1t_ref, b1c_ref, w2t_ref, b2c_ref, oT_ref):
    # Feature-major: xT (IN_DIM, TB), hidden (HIDDEN, TB), out (N_ACTIONS, TB).
    # Batch lives on the lane axis throughout; every lane (batch element) is
    # independent, which is what makes the unpadded / ragged final block safe.
    xT = xT_ref[...]                                   # (2, TB)
    w1t = w1t_ref[...]                                 # (32, 2)
    # Layer 1: K=2 -> two VPU broadcast-FMAs (an MXU dot would pad K to 128+).
    h = (w1t[:, 0:1] * xT[0:1, :]
         + w1t[:, 1:2] * xT[1:2, :]
         + b1c_ref[...])                               # (32, TB)
    h = jnp.maximum(h, 0.0)                            # ReLU
    # Layer 2: K=32 on the MXU (free filler under DMA for this mem-bound kernel).
    y = jnp.dot(w2t_ref[...], h, preferred_element_type=jnp.float32)
    y = y + b2c_ref[...]                               # (3, TB)
    oT_ref[...] = y.astype(oT_ref.dtype)


def pmodel_forward_fm(xT, w1, b1, w2, b2, *, block_b=32768):
    """Feature-major fast path: xT (2, B) -> (N_ACTIONS, B), no layout plumbing."""
    assert xT.shape[0] == IN_DIM
    B = xT.shape[1]

    # Batch tile on the lane axis: multiple of 128, capped so that (a) it does
    # not exceed block_b and (b) the grid has >= 2 steps whenever B allows it.
    tb = min(_round_up(block_b, 128), _round_up(pl.cdiv(B, 2), 128))
    tb = max(tb, 128)
    if B <= tb:
        tb = B                     # single full-extent block (full-dim exception)
    num_tiles = pl.cdiv(B, tb)     # ragged final block handled (masked) by Mosaic

    # Tiny parameter reshapes (a few hundred bytes, once per call).
    w1t = w1.T                                        # (HIDDEN, IN_DIM)
    b1c = jnp.reshape(b1, (HIDDEN, 1))                # (HIDDEN, 1)
    w2t = w2.T                                        # (N_ACTIONS, HIDDEN)
    b2c = jnp.reshape(b2, (N_ACTIONS, 1))             # (N_ACTIONS, 1)

    resident = lambda shape: pl.BlockSpec(shape, lambda i: (0, 0))

    cost = pl.CostEstimate(
        flops=2 * B * (IN_DIM * HIDDEN + HIDDEN * N_ACTIONS),
        transcendentals=0,
        bytes_accessed=4 * (B * (IN_DIM + N_ACTIONS)
                            + IN_DIM * HIDDEN + HIDDEN
                            + HIDDEN * N_ACTIONS + N_ACTIONS),
    )

    return pl.pallas_call(
        _mlp_kernel,
        out_shape=jax.ShapeDtypeStruct((N_ACTIONS, B), xT.dtype),
        grid=(num_tiles,),
        in_specs=[
            pl.BlockSpec((IN_DIM, tb), lambda i: (0, i)),   # x tile, pipelined
            resident((HIDDEN, IN_DIM)),                     # w1^T, resident in VMEM
            resident((HIDDEN, 1)),                          # b1
            resident((N_ACTIONS, HIDDEN)),                  # w2^T
            resident((N_ACTIONS, 1)),                       # b2
        ],
        out_specs=pl.BlockSpec((N_ACTIONS, tb), lambda i: (0, i)),  # lane-dense store
        compiler_params=pltpu.CompilerParams(
            dimension_semantics=("parallel",),
            vmem_limit_bytes=32 * 1024 * 1024,
        ),
        cost_estimate=cost,
    )(xT, w1t, b1c, w2t, b2c)


def pmodel_forward(x, w1, b1, w2, b2, *, block_b=32768):
    """PyTorch-layout compatibility wrapper: x (B, 2) -> (B, N_ACTIONS).

    Prefer `pmodel_forward_fm` (feature-major in/out) in performance-critical
    code: the two transposes here are extra HBM round trips for large batches.
    """
    yT = pmodel_forward_fm(x.T, w1, b1, w2, b2, block_b=block_b)
    return yT.T


def init_params(key):
    """Deterministic init mimicking torch.nn.Linear default (U[-1/sqrt(fan_in), +])."""
    k1, k2, k3, k4 = jax.random.split(key, 4)
    bound1 = 1.0 / jnp.sqrt(IN_DIM)
    bound2 = 1.0 / jnp.sqrt(HIDDEN)
    w1 = jax.random.uniform(k1, (IN_DIM, HIDDEN), jnp.float32, -bound1, bound1)
    b1 = jax.random.uniform(k2, (1, HIDDEN), jnp.float32, -bound1, bound1)
    w2 = jax.random.uniform(k3, (HIDDEN, N_ACTIONS), jnp.float32, -bound2, bound2)
    b2 = jax.random.uniform(k4, (1, N_ACTIONS), jnp.float32, -bound2, bound2)
    return w1, b1, w2, b2


def _reference(x, w1, b1, w2, b2):
    return jnp.maximum(x @ w1 + b1, 0.0) @ w2 + b2


if __name__ == "__main__":
    key = jax.random.PRNGKey(0)
    pkey, xkey1, xkey2 = jax.random.split(key, 3)
    w1, b1, w2, b2 = init_params(pkey)

    # (1) Small batch through the PyTorch-layout wrapper (single full block).
    B = 8
    x = jax.random.uniform(xkey1, (B, IN_DIM), jnp.float32, minval=-1.2, maxval=0.6)
    out = jax.block_until_ready(pmodel_forward(x, w1, b1, w2, b2))
    ref = _reference(x, w1, b1, w2, b2)
    assert out.shape == (B, N_ACTIONS)
    assert jnp.allclose(out, ref, atol=1e-5), "mismatch vs reference (B=8)"

    # (2) Multi-tile + unpadded ragged final block through the feature-major
    #     fast path: B=300, tb=256 -> grid of 2, last block has 44 valid lanes.
    B2 = 300
    x2 = jax.random.uniform(xkey2, (B2, IN_DIM), jnp.float32, minval=-1.2, maxval=0.6)
    yT = jax.block_until_ready(pmodel_forward_fm(x2.T, w1, b1, w2, b2, block_b=256))
    ref2 = _reference(x2, w1, b1, w2, b2)
    assert yT.shape == (N_ACTIONS, B2)
    assert jnp.allclose(yT.T, ref2, atol=1e-5), "mismatch vs reference (B=300, tiled/ragged)"

    print("KERNEL_OK")
</pallas_src>

<mosaic_0001>
module attributes {stable_mosaic.version = 11 : i64} {
  func.func @_mlp_kernel(%arg0: i32, %arg1: memref<2x8xf32, #tpu.memory_space<vmem>>, %arg2: memref<32x2xf32, #tpu.memory_space<vmem>>, %arg3: memref<32x1xf32, #tpu.memory_space<vmem>>, %arg4: memref<3x32xf32, #tpu.memory_space<vmem>>, %arg5: memref<3x1xf32, #tpu.memory_space<vmem>>, %arg6: memref<3x8xf32, #tpu.memory_space<vmem>>) attributes {dimension_semantics = [#tpu.dimension_semantics<parallel>], iteration_bounds = array<i64: 1>, scalar_prefetch = 0 : i64, scratch_operands = 0 : i64, tpu.core_type = #tpu.core_type<tc>, window_params = [{transform_indices = @transform_0, window_bounds = array<i64: 2, 8>}, {pipeline_mode = #tpu.pipeline_mode<synchronous>, transform_indices = @transform_1, window_bounds = array<i64: 32, 2>}, {pipeline_mode = #tpu.pipeline_mode<synchronous>, transform_indices = @transform_2, window_bounds = array<i64: 32, 1>}, {pipeline_mode = #tpu.pipeline_mode<synchronous>, transform_indices = @transform_3, window_bounds = array<i64: 3, 32>}, {pipeline_mode = #tpu.pipeline_mode<synchronous>, transform_indices = @transform_4, window_bounds = array<i64: 3, 1>}, {transform_indices = @transform_5, window_bounds = array<i64: 3, 8>}]} {
    %c0 = arith.constant 0 : index
    %c0_0 = arith.constant 0 : index
    %0 = vector.load %arg1[%c0, %c0_0] : memref<2x8xf32, #tpu.memory_space<vmem>>, vector<2x8xf32>
    %c0_1 = arith.constant 0 : index
    %c0_2 = arith.constant 0 : index
    %1 = vector.load %arg2[%c0_1, %c0_2] : memref<32x2xf32, #tpu.memory_space<vmem>>, vector<32x2xf32>
    %2 = vector.extract_strided_slice %1 {offsets = [0, 0], sizes = [32, 1], strides = [1, 1]} : vector<32x2xf32> to vector<32x1xf32>
    %3 = vector.extract_strided_slice %0 {offsets = [0, 0], sizes = [1, 8], strides = [1, 1]} : vector<2x8xf32> to vector<1x8xf32>
    %4 = vector.broadcast %2 : vector<32x1xf32> to vector<32x8xf32>
    %5 = vector.broadcast %3 : vector<1x8xf32> to vector<32x8xf32>
    %6 = arith.mulf %4, %5 : vector<32x8xf32>
    %7 = vector.extract_strided_slice %1 {offsets = [0, 1], sizes = [32, 1], strides = [1, 1]} : vector<32x2xf32> to vector<32x1xf32>
    %8 = vector.extract_strided_slice %0 {offsets = [1, 0], sizes = [1, 8], strides = [1, 1]} : vector<2x8xf32> to vector<1x8xf32>
    %9 = vector.broadcast %7 : vector<32x1xf32> to vector<32x8xf32>
    %10 = vector.broadcast %8 : vector<1x8xf32> to vector<32x8xf32>
    %11 = arith.mulf %9, %10 : vector<32x8xf32>
    %12 = arith.addf %6, %11 : vector<32x8xf32>
    %c0_3 = arith.constant 0 : index
    %c0_4 = arith.constant 0 : index
    %13 = vector.load %arg3[%c0_3, %c0_4] : memref<32x1xf32, #tpu.memory_space<vmem>>, vector<32x1xf32>
    %14 = vector.broadcast %13 : vector<32x1xf32> to vector<32x8xf32>
    %15 = arith.addf %12, %14 : vector<32x8xf32>
    %cst = arith.constant 0.000000e+00 : f32
    %16 = vector.broadcast %cst : f32 to vector<32x8xf32>
    %17 = arith.maximumf %15, %16 : vector<32x8xf32>
    %c0_5 = arith.constant 0 : index
    %c0_6 = arith.constant 0 : index
    %18 = vector.load %arg4[%c0_5, %c0_6] : memref<3x32xf32, #tpu.memory_space<vmem>>, vector<3x32xf32>
    %cst_7 = arith.constant dense<0.000000e+00> : vector<3x8xf32>
    %19 = tpu.matmul %18, %17, %cst_7 {dimension_numbers = #tpu.dot_dimension_numbers<[1], [0], [0], [1], [0, 0, 1, 1], [], []>} : vector<3x32xf32>, vector<32x8xf32>, vector<3x8xf32> -> vector<3x8xf32>
    %c0_8 = arith.constant 0 : index
    %c0_9 = arith.constant 0 : index
    %20 = vector.load %arg5[%c0_8, %c0_9] : memref<3x1xf32, #tpu.memory_space<vmem>>, vector<3x1xf32>
    %21 = vector.broadcast %20 : vector<3x1xf32> to vector<3x8xf32>
    %22 = arith.addf %19, %21 : vector<3x8xf32>
    %c0_10 = arith.constant 0 : index
    %c0_11 = arith.constant 0 : index
    %23 = vector.load %arg6[%c0_10, %c0_11] : memref<3x8xf32, #tpu.memory_space<vmem>>, vector<3x8xf32>
    tpu.vector_store %arg6[%c0_10, %c0_11], %22 {strides = array<i32>} : memref<3x8xf32, #tpu.memory_space<vmem>>, vector<3x8xf32>,
    return
  }
  func.func @transform_0(%arg0: i32) -> (i32, i32) {
    %c0_i32 = arith.constant 0 : i32
    %c0_i32_0 = arith.constant 0 : i32
    return %c0_i32, %arg0 : i32, i32
  }
  func.func @transform_1(%arg0: i32) -> (i32, i32) {
    %c0_i32 = arith.constant 0 : i32
    %c0_i32_0 = arith.constant 0 : i32
    %c0_i32_1 = arith.constant 0 : i32
    return %c0_i32, %c0_i32_0 : i32, i32
  }
  func.func @transform_2(%arg0: i32) -> (i32, i32) {
    %c0_i32 = arith.constant 0 : i32
    %c0_i32_0 = arith.constant 0 : i32
    %c0_i32_1 = arith.constant 0 : i32
    return %c0_i32, %c0_i32_0 : i32, i32
  }
  func.func @transform_3(%arg0: i32) -> (i32, i32) {
    %c0_i32 = arith.constant 0 : i32
    %c0_i32_0 = arith.constant 0 : i32
    %c0_i32_1 = arith.constant 0 : i32
    return %c0_i32, %c0_i32_0 : i32, i32
  }
  func.func @transform_4(%arg0: i32) -> (i32, i32) {
    %c0_i32 = arith.constant 0 : i32
    %c0_i32_0 = arith.constant 0 : i32
    %c0_i32_1 = arith.constant 0 : i32
    return %c0_i32, %c0_i32_0 : i32, i32
  }
  func.func @transform_5(%arg0: i32) -> (i32, i32) {
    %c0_i32 = arith.constant 0 : i32
    %c0_i32_0 = arith.constant 0 : i32
    return %c0_i32, %arg0 : i32, i32
  }
}

</mosaic_0001>

<bundles_post_ra>
// kernel: tpu_custom_call.1
= control target key start
LH: loop header
LB: loop body
LE: loop exit
PB: predicated region body
PF: predicated region fallthrough
CT: control target
= control target key end

     0   :  { %v270_v2 = vmov 1   ;;  %s351_s0 = inlined_call_operand.vmem [shape: f32[2,8], index: 0, kind: input, shape index: {}]   ;;  %s352_s1 = inlined_call_operand.vmem [shape: f32[32,2], index: 1, kind: input, shape index: {}]   ;;  %s353_s2 = inlined_call_operand.vmem [shape: f32[32,1], index: 2, kind: input, shape index: {}]   ;;  %s354_s3 = inlined_call_operand.vmem [shape: f32[3,32], index: 3, kind: input, shape index: {}]   ;;  %s355_s4 = inlined_call_operand.vmem [shape: f32[3,1], index: 4, kind: input, shape index: {}]   ;;  %s356_s5 = inlined_call_operand.hbm [shape: f32[3,8], index: 5, kind: output, shape index: {}]  }
   0x1   :  { %v24_v0 = vld [vmem:[%s352_s1 + $0x10] sm:$0xff]  ;;  %v22_v1 = vld [vmem:[%s352_s1] sm:$0xff]  ;;  %242 = vset.pattern.permute.xlu0 %v270_v2  ;;  %240 = vset.pattern.permute.xlu1 %v270_v2  ;;  %v23_v3 = vld [vmem:[%s352_s1 + $0x8] sm:$0xff] }
   0x2   :  { %63 = vperm.xlu0 %242, %v24_v0   ;;  %55 = vperm.xlu1 %240, %v22_v1  }
   0x3   :  { %10 = vsyncpa [#allocation3], 0  ;;  %v271_v4 = vmov 0   ;;  %v25_v5 = vld [vmem:[%s352_s1 + $0x18] sm:$0xff]  ;;  %v83_v6 = vld [vmem:[%s353_s2 + $0x8] sm:$0xff]  ;;  %v272_v11 = vmov 0.0|0.0   ;;  %v46_v13 = vlaneseq }
   0x4   :  { %v82_v7 = vld [vmem:[%s353_s2] sm:$0xff]  ;;  %v84_v9 = vld [vmem:[%s353_s2 + $0x10] sm:$0xff]  ;;  %v85_v10 = vld [vmem:[%s353_s2 + $0x18] sm:$0xff]  ;;  %228 = vmatprep.subr.bf16.mxu0 %v272_v11  ;;  %vm273_vm0 = vmmov 0   ;;  %v274_v12 = vmov 0.0   ;;  %vm121_vm1 = vcmask 261120  }
   0x5   :  { %v115_v8 = vld [vmem:[%s355_s4] sm:$0x7]  ;;  %225 = vmatprep.mubr.msk.f32.mxu0 %vm273_vm0, %v274_v12  ;;  %v47_v16 = vshrl.u32 %v46_v13, 7  ;;  %s275_s11 = smov [#allocation2]   ;;  %vm195_vm2 = vcmask 59392  }
   0x6   :  { %243 = vset.pattern.permute.xlu0 %v271_v4  ;;  %59 = vperm.xlu1 %240, %v23_v3   ;;  %v21_v21 = vld [vmem:[%s351_s0] sm:$0x3]  ;;  %s203_s12 = sshll.u32 %s275_s11, 4  ;;  %s204_s12 = int_to_ptr.vmem [resolvable:$true] %s203_s12 }
   0x7   :  { %28 = vperm.xlu0 %243, %v22_v1   ;;  %v48_v19 = vsub.s32 0, %v47_v16  ;;  %v72_v20 = vsub.s32 1, %v47_v16  ;;  %v114_v54 = vld [vmem:[%s354_s3] sm:$0x7]  ;;  %s246_s13 = scalar_lea.vmem %s204_s12, 64  ;;  %p251_p1 = scmp.lt.s32.totalorder %s204_s12, %s204_s12 }
   0x8   :  { %p247_p0 = scmp.ne.s32.totalorder %s204_s12, %s246_s13  ;;  %p252_p2 = scmp.lt.s32.totalorder %s246_s13, %s246_s13 }
   0x9   :  { %v49_v24 = vrot.slane %v21_v21, %v48_v19  ;;  %v73_v25 = vrot.slane %v21_v21, %v72_v20 }
   0xa   :  { %241 = vset.pattern.permute.xlu1 %v271_v4  ;;  %p253_p3 = por %p252_p2, %p251_p1 }
   0xb   :  { %33 = vperm.xlu0 %243, %v23_v3   ;;  %43 = vperm.xlu1 %241, %v25_v5  }
   0xc   :  { %p254_p4 = pnand %p253_p3, %p247_p0 }
   0xf   :  { %38 = vperm.xlu0 %243, %v24_v0   ;;  %244 = vset.pattern.permute.xlu1 %v270_v2 }
  0x10   :  { %67 = vperm.xlu1 %244, %v25_v5  }
  0x13   :  { %93 = vperm.xlu0 %243, %v83_v6  }
  0x14   :  { %245 = vset.pattern.permute.xlu1 %v271_v4 }
  0x15   :  { %88 = vperm.xlu1 %245, %v82_v7  }
  0x17   :  { %118 = vperm.xlu0 %243, %v115_v8  }
  0x19   :  { %98 = vperm.xlu1 %245, %v84_v9  }
  0x1d   :  { %103 = vperm.xlu1 %245, %v85_v10  }
  0x81   :  { %v56_v14 = vpop.permute.xlu1 %55  ;;  %v64_v15 = vpop.permute.xlu0 %63 }
  0x82   :  { %v74_v31 = vmul.f32 %v73_v25, %v56_v14  ;;  %v76_v39 = vmul.f32 %v73_v25, %v64_v15 }
  0x85   :  { %v60_v17 = vpop.permute.xlu1 %59 }
  0x86   :  { %v29_v18 = vpop.permute.xlu0 %28  ;;  %v75_v28 = vmul.f32 %v73_v25, %v60_v17 }
  0x87   :  { %v50_v29 = vmul.f32 %v49_v24, %v29_v18 }
  0x89   :  { %v78_v35 = vadd.f32 %v74_v31, %v50_v29 }
  0x8a   :  { %v34_v22 = vpop.permute.xlu0 %33  ;;  %v44_v23 = vpop.permute.xlu1 %43 }
  0x8b   :  { %v51_v26 = vmul.f32 %v49_v24, %v34_v22  ;;  %v53_v44 = vmul.f32 %v49_v24, %v44_v23 }
  0x8d   :  { %v79_v32 = vadd.f32 %v75_v28, %v51_v26 }
  0x8e   :  { %v39_v27 = vpop.permute.xlu0 %38 }
  0x8f   :  { %v68_v30 = vpop.permute.xlu1 %67  ;;  %v52_v37 = vmul.f32 %v49_v24, %v39_v27 }
  0x90   :  { %v77_v40 = vmul.f32 %v73_v25, %v68_v30 }
  0x91   :  { %v80_v45 = vadd.f32 %v76_v39, %v52_v37 }
  0x92   :  { %v94_v33 = vpop.permute.xlu0 %93  ;;  %v81_v48 = vadd.f32 %v77_v40, %v53_v44 }
  0x93   :  { %v107_v34 = vadd.f32 %v94_v33, %v79_v32 }
  0x94   :  { %v89_v36 = vpop.permute.xlu1 %88 }
  0x95   :  { %v106_v38 = vadd.f32 %v89_v36, %v78_v35  ;;  %v111_v41 = vmax.f32 %v107_v34, 0.0 }
  0x96   :  { %v119_v55 = vpop.permute.xlu0 %118 }
  0x97   :  { %v110_v42 = vmax.f32 %v106_v38, 0.0 }
  0x98   :  { %v99_v43 = vpop.permute.xlu1 %98 }
  0x99   :  { %v229_v46 = vpack.c.bf16 %v111_v41, %v110_v42  ;;  %v108_v47 = vadd.f32 %v99_v43, %v80_v45 }
  0x9b   :  { %230 = vmatpush3.bf16.msra.mxu0 %v229_v46  ;;  %v112_v51 = vmax.f32 %v108_v47, 0.0 }
  0x9c   :  { %v104_v49 = vpop.permute.xlu1 %103  ;;  %231 = vmatprep.subr.bf16.mxu0 %v272_v11 }
  0x9d   :  { %v109_v50 = vadd.f32 %v104_v49, %v81_v48 }
  0x9f   :  { %v113_v52 = vmax.f32 %v109_v50, 0.0 }
  0xa1   :  { %v232_v53 = vpack.c.bf16 %v113_v52, %v112_v51 }
  0xa3   :  { %233 = vmatpush3.bf16.msra.mxu0 %v232_v53 }
  0xa6   :  { %226 = vmatmul.mubr.msk.f32.vlgmr.msra.gmra.mrb[0].mxu0 %vm121_vm1, %v114_v54 }
 0x179   :  { %v191_v56 = vpop.f32.mrb[0].mxu0 }
 0x17a   :  { %v192_v57 = vadd.f32 %v191_v56, %v119_v55  ;;  %v227_v58 = vpop.f32.mrb[1].mxu0 }
 0x17c   :  { %196 = vst.msk [vmem:[#allocation2] sm:$0x7] %vm195_vm2, %v192_v57 }
 0x17d   :  { %257 = shalt.err (!%p254_p4)
}
 0x17e   :  { %s258_s15 = scalar_lea.hbm %s356_s5, 64 }
 0x17f   :  { %p259_p5 = scmp.ne.s32.totalorder %s356_s5, %s258_s15  ;;  %p262_p6 = scmp.lt.u32.totalorder %s258_s15, %s356_s5 }
 0x181   :  { %p264_p7 = pnand %p262_p6, %p259_p5 }
 0x183   :  { %267 = shalt.err (!%p264_p7)
}
 0x184   :  { %206 = dma.vmem_to_hbm [thread:$0]  %s204_s12, 64, %s356_s5, [#allocation3]  }
 0x185   :  { %268 = dma.done.wait [#allocation3], 64  }
 0x186   :  { %269 = vsyncadd [#allocation3], 4294967232 }
 0x187   :  { %210 = vsyncpa [#allocation3], 1 }

</bundles_post_ra>
